<compile_context>
chip_gen: v5e
topology: v5e:2x2
jax: 0.10.0
libtpu: 0.0.40
codegen_flags: <defaults>
</compile_context>

<pallas_src>
import functools

import jax
import jax.numpy as jnp
import numpy as np
from jax import lax
from jax.experimental import pallas as pl
from jax.experimental.pallas import tpu as pltpu

_K1D = (0.05, 0.25, 0.4, 0.25, 0.05)   # separable Gaussian taps (K = k^T k)
_EPS = 1e-3                            # CharbonnierLoss eps
_LANES = 128
_MAX_BT = 128                          # cap on rows per block (unroll sanity)


# --------------------- host-side operator construction ----------------------

def _gauss_matrix(n: int) -> np.ndarray:
    """A (n, n) with A @ v == 5-tap Gaussian blur of v under replicate padding."""
    a = np.zeros((n, n), np.float64)
    for i in range(n):
        for t, wt in enumerate(_K1D):
            j = min(max(i + t - 2, 0), n - 1)
            a[i, j] += wt
    return a


@functools.lru_cache(maxsize=8)
def _edge_operators(h: int, w: int):
    """P_H, Q_W such that laplacian(d) == d - P_H @ d @ Q_W (exact algebra)."""
    ah = _gauss_matrix(h)
    aw = _gauss_matrix(w)
    even_h = (np.arange(h) % 2 == 0).astype(np.float64)
    even_w = (np.arange(w) % 2 == 0).astype(np.float64)
    ph = 2.0 * (ah * even_h[None, :]) @ ah          # 2 * A_H   D_h A_H
    qw = 2.0 * (aw.T * even_w[None, :]) @ aw.T      # 2 * A_W^T D_w A_W^T
    return jnp.asarray(ph, jnp.float32), jnp.asarray(qw, jnp.float32)


# ------------------------ VMEM sizing (per generation) ----------------------

def _vmem_config():
    """(block_budget_bytes, vmem_limit_bytes), generation-aware."""
    try:
        phys = int(pltpu.get_tpu_info().vmem_capacity_bytes)
    except Exception:
        phys = 64 * 1024 * 1024                      # conservative (v7x-sized)
    if phys >= 96 * 1024 * 1024:                     # v5e / v6e: 128 MiB VMEM
        return 72 * 1024 * 1024, 100 * 1024 * 1024
    return 20 * 1024 * 1024, 32 * 1024 * 1024        # v7x: 64 MiB phys / 32 scoped


def _pick_block_b(b, h, w, budget_bytes):
    """Rows per block: as large as the VMEM budget allows, but keep grid >= 2."""
    img_bytes = h * w * 4
    fixed = 2 * (h * h + w * w) * 4                  # single-buffered operators
    # 2 inputs x 2 pipeline buffers + d, t intermediates + epilogue/spill slack.
    per_row = 10 * img_bytes
    usable = int(budget_bytes * 0.8) - fixed         # 20% headroom
    cap = max(1, usable // per_row)
    cap = min(cap, _MAX_BT)
    cap = min(cap, max(1, b // 2))                   # g >= 2: pipelining + v7x dual-TC
    return int(max(1, min(b, cap)))


def _const_spec(shape):
    """BlockSpec for grid-invariant operands; single-buffered when supported."""
    idx = lambda i: (0, 0)
    try:
        return pl.BlockSpec(shape, idx, pipeline_mode=pl.Buffered(1))
    except Exception:
        return pl.BlockSpec(shape, idx)


# ---------------------------- Pallas kernel ---------------------------------

def _edge_loss_kernel(x_ref, y_ref, ph_ref, qw_ref, o_ref):
    # x_ref, y_ref: (Bt, H, W) tiles (f32/bf16/f16); ph_ref: (H,H); qw_ref: (W,W)
    # o_ref: (1, 1, 128) lane-dense per-block partial Charbonnier sum.
    bt, h, w = x_ref.shape
    ph = ph_ref[...]
    qw = qw_ref[...]
    eps2 = jnp.float32(_EPS * _EPS)

    # lap(x) - lap(y) == lap(d); upcast streamed (possibly bf16) tiles here.
    d = x_ref[...].astype(jnp.float32) - y_ref[...].astype(jnp.float32)

    if h % 8 == 0:
        # Q-side contraction as ONE flat MXU matmul (M = Bt*H); the reshape is
        # a free relayout because H is a multiple of the f32 sublane count.
        t = jnp.dot(d.reshape(bt * h, w), qw,
                    preferred_element_type=jnp.float32).reshape(bt, h, w)
    else:
        t = None

    # P-side: weight-stationary 2D matmuls per batch row.  No broadcast of the
    # operators to the batch dim -> no (Bt,H,H)/(Bt,W,W) VMEM blow-up.
    total = jnp.float32(0.0)
    for i in range(bt):
        d_i = d[i]
        t_i = t[i] if t is not None else jnp.dot(
            d_i, qw, preferred_element_type=jnp.float32)
        f2_i = jnp.dot(ph, t_i, preferred_element_type=jnp.float32)
        lap = d_i - f2_i
        total = total + jnp.sum(jnp.sqrt(lap * lap + eps2))

    o_ref[...] = jnp.full((1, 1, _LANES), total, jnp.float32)


def edge_loss(x, y):
    """x, y: (N, C, H, W) -> scalar Charbonnier(edge(x), edge(y))."""
    n, c, h, w = x.shape
    b = n * c

    # Stream narrow floats in their native dtype (halves HBM traffic); upcast
    # happens inside the kernel.  Anything else is cast to f32 up front.
    if x.dtype in (jnp.bfloat16, jnp.float16, jnp.float32):
        stream_dtype = x.dtype
    else:
        stream_dtype = jnp.float32
    xb = x.reshape(b, h, w).astype(stream_dtype)
    yb = y.reshape(b, h, w).astype(stream_dtype)
    ph, qw = _edge_operators(h, w)

    budget, vmem_limit = _vmem_config()
    bt = _pick_block_b(b, h, w, budget)
    g = -(-b // bt)
    pad = g * bt - b
    if pad:
        # Zero-padded rows contribute exactly eps per element; subtracted below.
        xb = jnp.pad(xb, ((0, pad), (0, 0), (0, 0)))
        yb = jnp.pad(yb, ((0, pad), (0, 0), (0, 0)))

    partial = pl.pallas_call(
        _edge_loss_kernel,
        grid=(g,),
        in_specs=[
            pl.BlockSpec((bt, h, w), lambda i: (i, 0, 0)),
            pl.BlockSpec((bt, h, w), lambda i: (i, 0, 0)),
            _const_spec((h, h)),
            _const_spec((w, w)),
        ],
        out_specs=pl.BlockSpec((1, 1, _LANES), lambda i: (i, 0, 0)),
        out_shape=jax.ShapeDtypeStruct((g, 1, _LANES), jnp.float32),
        compiler_params=pltpu.CompilerParams(
            dimension_semantics=("parallel",),
            vmem_limit_bytes=vmem_limit,
        ),
    )(xb, yb, ph, qw)

    total = jnp.sum(partial[:, 0, 0])
    if pad:
        total = total - jnp.float32(pad * h * w) * jnp.sqrt(jnp.float32(_EPS * _EPS))
    # Global mean over the GLOBAL (unpadded) element count.
    return total / jnp.float32(b * h * w)


# ------------------------- pure-JAX reference -------------------------------

def _edge_loss_ref(x, y):
    k1 = jnp.array(_K1D, jnp.float32)
    K = jnp.outer(k1, k1)
    wgt = jnp.tile(K[None, None], (3, 1, 1, 1))  # OIHW, groups=3

    def conv_gauss(img):
        p = jnp.pad(img, ((0, 0), (0, 0), (2, 2), (2, 2)), mode='edge')
        return lax.conv_general_dilated(
            p, wgt, window_strides=(1, 1), padding='VALID',
            dimension_numbers=('NCHW', 'OIHW', 'NCHW'),
            feature_group_count=3)

    def lap(img):
        f = conv_gauss(img)
        nf = jnp.zeros_like(f).at[:, :, ::2, ::2].set(f[:, :, ::2, ::2] * 4.0)
        return img - conv_gauss(nf)

    d = lap(x) - lap(y)
    return jnp.mean(jnp.sqrt(d * d + _EPS * _EPS))


if __name__ == "__main__":
    key = jax.random.PRNGKey(0)
    kx, ky = jax.random.split(key)
    x = jax.random.uniform(kx, (2, 3, 16, 16), dtype=jnp.float32)
    y = jax.random.uniform(ky, (2, 3, 16, 16), dtype=jnp.float32)

    loss = edge_loss(x, y)
    jax.block_until_ready(loss)

    ref = _edge_loss_ref(x, y)
    # rtol slightly looser than pure-VPU f32: MXU matmul summation order differs.
    assert jnp.allclose(loss, ref, rtol=1e-3, atol=1e-5), (float(loss), float(ref))
    print("KERNEL_OK")
</pallas_src>

<mosaic_0001>
module attributes {stable_mosaic.version = 11 : i64} {
  func.func @_edge_loss_kernel(%arg0: i32, %arg1: memref<3x16x16xf32, #tpu.memory_space<vmem>>, %arg2: memref<3x16x16xf32, #tpu.memory_space<vmem>>, %arg3: memref<16x16xf32, #tpu.memory_space<vmem>>, %arg4: memref<16x16xf32, #tpu.memory_space<vmem>>, %arg5: memref<1x1x128xf32, #tpu.memory_space<vmem>>) attributes {dimension_semantics = [#tpu.dimension_semantics<parallel>], iteration_bounds = array<i64: 2>, scalar_prefetch = 0 : i64, scratch_operands = 0 : i64, tpu.core_type = #tpu.core_type<tc>, window_params = [{transform_indices = @transform_0, window_bounds = array<i64: 3, 16, 16>}, {transform_indices = @transform_1, window_bounds = array<i64: 3, 16, 16>}, {pipeline_mode = #tpu.pipeline_mode<synchronous>, transform_indices = @transform_2, window_bounds = array<i64: 16, 16>}, {pipeline_mode = #tpu.pipeline_mode<synchronous>, transform_indices = @transform_3, window_bounds = array<i64: 16, 16>}, {transform_indices = @transform_4, window_bounds = array<i64: 1, 1, 128>}]} {
    %c0 = arith.constant 0 : index
    %c0_0 = arith.constant 0 : index
    %0 = vector.load %arg3[%c0, %c0_0] : memref<16x16xf32, #tpu.memory_space<vmem>>, vector<16x16xf32>
    %c0_1 = arith.constant 0 : index
    %c0_2 = arith.constant 0 : index
    %1 = vector.load %arg4[%c0_1, %c0_2] : memref<16x16xf32, #tpu.memory_space<vmem>>, vector<16x16xf32>
    %c0_3 = arith.constant 0 : index
    %c0_4 = arith.constant 0 : index
    %c0_5 = arith.constant 0 : index
    %2 = vector.load %arg1[%c0_3, %c0_4, %c0_5] : memref<3x16x16xf32, #tpu.memory_space<vmem>>, vector<3x16x16xf32>
    %c0_6 = arith.constant 0 : index
    %c0_7 = arith.constant 0 : index
    %c0_8 = arith.constant 0 : index
    %3 = vector.load %arg2[%c0_6, %c0_7, %c0_8] : memref<3x16x16xf32, #tpu.memory_space<vmem>>, vector<3x16x16xf32>
    %4 = arith.subf %2, %3 : vector<3x16x16xf32>
    %5 = vector.shape_cast %4 : vector<3x16x16xf32> to vector<48x16xf32>
    %cst = arith.constant dense<0.000000e+00> : vector<48x16xf32>
    %6 = tpu.matmul %5, %1, %cst {dimension_numbers = #tpu.dot_dimension_numbers<[1], [0], [0], [1], [0, 0, 1, 1], [], []>} : vector<48x16xf32>, vector<16x16xf32>, vector<48x16xf32> -> vector<48x16xf32>
    %7 = vector.shape_cast %6 : vector<48x16xf32> to vector<3x16x16xf32>
    %8 = vector.extract_strided_slice %4 {offsets = [0, 0, 0], sizes = [1, 16, 16], strides = [1, 1, 1]} : vector<3x16x16xf32> to vector<1x16x16xf32>
    %9 = vector.shape_cast %8 : vector<1x16x16xf32> to vector<16x16xf32>
    %10 = vector.extract_strided_slice %7 {offsets = [0, 0, 0], sizes = [1, 16, 16], strides = [1, 1, 1]} : vector<3x16x16xf32> to vector<1x16x16xf32>
    %11 = vector.shape_cast %10 : vector<1x16x16xf32> to vector<16x16xf32>
    %cst_9 = arith.constant dense<0.000000e+00> : vector<16x16xf32>
    %12 = tpu.matmul %0, %11, %cst_9 {dimension_numbers = #tpu.dot_dimension_numbers<[1], [0], [0], [1], [0, 0, 1, 1], [], []>} : vector<16x16xf32>, vector<16x16xf32>, vector<16x16xf32> -> vector<16x16xf32>
    %13 = arith.subf %9, %12 : vector<16x16xf32>
    %14 = arith.mulf %13, %13 : vector<16x16xf32>
    %cst_10 = arith.constant 9.99999997E-7 : f32
    %15 = vector.broadcast %cst_10 : f32 to vector<16x16xf32>
    %16 = arith.addf %14, %15 : vector<16x16xf32>
    %17 = math.sqrt %16 : vector<16x16xf32>
    %18 = vector.shape_cast %17 : vector<16x16xf32> to vector<1x16x16xf32>
    %cst_11 = arith.constant dense<0.000000e+00> : vector<1xf32>
    %19 = vector.multi_reduction <add>, %18, %cst_11 [1, 2] : vector<1x16x16xf32> to vector<1xf32>
    %20 = vector.shape_cast %19 : vector<1xf32> to vector<1x1x1xf32>
    %21 = vector.extract %20[0, 0, 0] : f32 from vector<1x1x1xf32>
    %cst_12 = arith.constant 0.000000e+00 : f32
    %22 = arith.addf %cst_12, %21 : f32
    %23 = vector.extract_strided_slice %4 {offsets = [1, 0, 0], sizes = [1, 16, 16], strides = [1, 1, 1]} : vector<3x16x16xf32> to vector<1x16x16xf32>
    %24 = vector.shape_cast %23 : vector<1x16x16xf32> to vector<16x16xf32>
    %25 = vector.extract_strided_slice %7 {offsets = [1, 0, 0], sizes = [1, 16, 16], strides = [1, 1, 1]} : vector<3x16x16xf32> to vector<1x16x16xf32>
    %26 = vector.shape_cast %25 : vector<1x16x16xf32> to vector<16x16xf32>
    %cst_13 = arith.constant dense<0.000000e+00> : vector<16x16xf32>
    %27 = tpu.matmul %0, %26, %cst_13 {dimension_numbers = #tpu.dot_dimension_numbers<[1], [0], [0], [1], [0, 0, 1, 1], [], []>} : vector<16x16xf32>, vector<16x16xf32>, vector<16x16xf32> -> vector<16x16xf32>
    %28 = arith.subf %24, %27 : vector<16x16xf32>
    %29 = arith.mulf %28, %28 : vector<16x16xf32>
    %cst_14 = arith.constant 9.99999997E-7 : f32
    %30 = vector.broadcast %cst_14 : f32 to vector<16x16xf32>
    %31 = arith.addf %29, %30 : vector<16x16xf32>
    %32 = math.sqrt %31 : vector<16x16xf32>
    %33 = vector.shape_cast %32 : vector<16x16xf32> to vector<1x16x16xf32>
    %cst_15 = arith.constant dense<0.000000e+00> : vector<1xf32>
    %34 = vector.multi_reduction <add>, %33, %cst_15 [1, 2] : vector<1x16x16xf32> to vector<1xf32>
    %35 = vector.shape_cast %34 : vector<1xf32> to vector<1x1x1xf32>
    %36 = vector.extract %35[0, 0, 0] : f32 from vector<1x1x1xf32>
    %37 = arith.addf %22, %36 : f32
    %38 = vector.extract_strided_slice %4 {offsets = [2, 0, 0], sizes = [1, 16, 16], strides = [1, 1, 1]} : vector<3x16x16xf32> to vector<1x16x16xf32>
    %39 = vector.shape_cast %38 : vector<1x16x16xf32> to vector<16x16xf32>
    %40 = vector.extract_strided_slice %7 {offsets = [2, 0, 0], sizes = [1, 16, 16], strides = [1, 1, 1]} : vector<3x16x16xf32> to vector<1x16x16xf32>
    %41 = vector.shape_cast %40 : vector<1x16x16xf32> to vector<16x16xf32>
    %cst_16 = arith.constant dense<0.000000e+00> : vector<16x16xf32>
    %42 = tpu.matmul %0, %41, %cst_16 {dimension_numbers = #tpu.dot_dimension_numbers<[1], [0], [0], [1], [0, 0, 1, 1], [], []>} : vector<16x16xf32>, vector<16x16xf32>, vector<16x16xf32> -> vector<16x16xf32>
    %43 = arith.subf %39, %42 : vector<16x16xf32>
    %44 = arith.mulf %43, %43 : vector<16x16xf32>
    %cst_17 = arith.constant 9.99999997E-7 : f32
    %45 = vector.broadcast %cst_17 : f32 to vector<16x16xf32>
    %46 = arith.addf %44, %45 : vector<16x16xf32>
    %47 = math.sqrt %46 : vector<16x16xf32>
    %48 = vector.shape_cast %47 : vector<16x16xf32> to vector<1x16x16xf32>
    %cst_18 = arith.constant dense<0.000000e+00> : vector<1xf32>
    %49 = vector.multi_reduction <add>, %48, %cst_18 [1, 2] : vector<1x16x16xf32> to vector<1xf32>
    %50 = vector.shape_cast %49 : vector<1xf32> to vector<1x1x1xf32>
    %51 = vector.extract %50[0, 0, 0] : f32 from vector<1x1x1xf32>
    %52 = arith.addf %37, %51 : f32
    %53 = vector.broadcast %52 : f32 to vector<1x1x128xf32>
    %c0_19 = arith.constant 0 : index
    %c0_20 = arith.constant 0 : index
    %c0_21 = arith.constant 0 : index
    %54 = vector.load %arg5[%c0_19, %c0_20, %c0_21] : memref<1x1x128xf32, #tpu.memory_space<vmem>>, vector<1x1x128xf32>
    tpu.vector_store %arg5[%c0_19, %c0_20, %c0_21], %53 {strides = array<i32>} : memref<1x1x128xf32, #tpu.memory_space<vmem>>, vector<1x1x128xf32>,
    return
  }
  func.func @transform_0(%arg0: i32) -> (i32, i32, i32) {
    %c0_i32 = arith.constant 0 : i32
    %c0_i32_0 = arith.constant 0 : i32
    %c0_i32_1 = arith.constant 0 : i32
    return %arg0, %c0_i32, %c0_i32_0 : i32, i32, i32
  }
  func.func @transform_1(%arg0: i32) -> (i32, i32, i32) {
    %c0_i32 = arith.constant 0 : i32
    %c0_i32_0 = arith.constant 0 : i32
    %c0_i32_1 = arith.constant 0 : i32
    return %arg0, %c0_i32, %c0_i32_0 : i32, i32, i32
  }
  func.func @transform_2(%arg0: i32) -> (i32, i32) {
    %c0_i32 = arith.constant 0 : i32
    %c0_i32_0 = arith.constant 0 : i32
    %c0_i32_1 = arith.constant 0 : i32
    return %c0_i32, %c0_i32_0 : i32, i32
  }
  func.func @transform_3(%arg0: i32) -> (i32, i32) {
    %c0_i32 = arith.constant 0 : i32
    %c0_i32_0 = arith.constant 0 : i32
    %c0_i32_1 = arith.constant 0 : i32
    return %c0_i32, %c0_i32_0 : i32, i32
  }
  func.func @transform_4(%arg0: i32) -> (i32, i32, i32) {
    %c0_i32 = arith.constant 0 : i32
    %c0_i32_0 = arith.constant 0 : i32
    %c0_i32_1 = arith.constant 0 : i32
    return %arg0, %c0_i32, %c0_i32_0 : i32, i32, i32
  }
}

</mosaic_0001>

<bundles_post_ra>
// kernel: tpu_custom_call.1
= control target key start
LH: loop header
LB: loop body
LE: loop exit
PB: predicated region body
PF: predicated region fallthrough
CT: control target
= control target key end

     0   :  { %s1329_s0 = inlined_call_operand.hbm [shape: f32[6,16,16], index: 0, kind: input, shape index: {}]   ;;  %s1330_s1 = inlined_call_operand.hbm [shape: f32[6,16,16], index: 1, kind: input, shape index: {}]   ;;  %s1331_s2 = inlined_call_operand.hbm [shape: f32[16,16], index: 2, kind: input, shape index: {}]   ;;  %s1332_s3 = inlined_call_operand.hbm [shape: f32[16,16], index: 3, kind: input, shape index: {}]   ;;  %s1333_s4 = inlined_call_operand.hbm [shape: f32[2,1,128], index: 4, kind: output, shape index: {}]  }
   0x1   :  { %1339 = sst [smem:[#allocation18_spill]] %s1331_s2 }
   0x2   :  { %1340 = sst [smem:[#allocation19_spill]] %s1332_s3 }
   0x3   :  { %9 = vsyncpa [#allocation3], 0 }
   0x4   :  { %11 = vsyncpa [#allocation3 + $0x1], 0 }
   0x5   :  { %12 = vsyncpa [#allocation6], 0 }
   0x6   :  { %14 = vsyncpa [#allocation6 + $0x1], 0 }
   0x7   :  { %15 = vsyncpa [#allocation9], 0 }
   0x8   :  { %16 = vsyncpa [#allocation4], 0 }
   0x9   :  { %18 = vsyncpa [#allocation4 + $0x1], 0  ;;  %s1061_s15 = smov 0   ;;  %s1063_s16 = smov 0  }
   0xa   :  { %s1065_s17 = smov 0   ;;  %s1067_s18 = smov 0  }
   0xb LB: > { %1341 = sst [smem:[#allocation16_spill]] %s1026_s17  ;;  %s1082_s19 = sadd.s32 4294967295, %s1030_s18   ;;  %s1030_s18 = sphi %s1067_s18, %s1357_s18   ;;  %s1026_s17 = sphi %s1065_s17, %s1354_s17   ;;  %s1022_s16 = sphi %s1063_s16, %s1356_s16   ;;  %s1018_s15 = sphi %s1061_s15, %s1355_s15  }
   0xc   : > { %s699_s20 = sadd.s32 4294967294, %s1030_s18   ;;  %p44_p0 = scmp.ne.s32.totalorder %s1022_s16, %s1018_s15 }
   0xd   : > { %p45_p1 = scmp.eq.s32.totalorder %s1082_s19, 0  ;;  %p136_p2 = scmp.eq.s32.totalorder %s1082_s19, 1 }
   0xe   : > { %p142_p3 = scmp.eq.s32.totalorder %s699_s20, 1  ;;  %p700_p5 = scmp.ge.s32.totalorder %s1030_s18, 1 }
   0xf   : > { %p1091_p4 = por %p45_p1, %p44_p0  ;;  %p149_p7 = scmp.lt.s32.totalorder %s1030_s18, 3 }
  0x10   : > { %p1096_p6 = por %p142_p3, %p44_p0  ;;  %s1344_s2 = sld [smem:[#allocation18_spill]] }
  0x11   : > { %p1104_p8 = pnand %p700_p5, %p149_p7  ;;  %s1032_s27 = smov [#allocation7]  }
  0x12   : > { %s162_s28 = sshll.u32 %s1032_s27, 4  ;;  %s1346_s3 = sld [smem:[#allocation19_spill]]  ;;  %s163_s28 = int_to_ptr.vmem [resolvable:$true] %s162_s28 }
  0x13   : > { %p760_p9 = pneg %p1104_p8  ;;  %s1334_s6 = smov 128  }
  0x14   : > { %s1336_s7 = smov 8   ;;  %s1035_s8 = smov [#allocation8]  }
  0x15   : > { %p761_p10 = pnand %p760_p9, %p45_p1  ;;  %s176_s9 = sshll.u32 %s1035_s8, 4  ;;  %s177_s9 = int_to_ptr.vmem [resolvable:$true] %s176_s9 }
  0x16   : > { %s160_s25 = sshll.u32 %s1344_s2, 4  ;;  %s1123_s10 = sadd.s32 1, %s1030_s18   ;;  %s161_s25 = int_to_ptr.hbm [resolvable:$true] %s160_s25 }
  0x17   : > { %763 = dma.hbm_to_vmem [thread:$0]  (!%p761_p10), %s161_s25, 256, %s163_s28, [#allocation6], %s1334_s6, %s1334_s6, %s1336_s7  }
  0x18   : > { %s174_s5 = sshll.u32 %s1346_s3, 4  ;;  %s31_s11 = sadd.s32 1, %s1026_s17  ;;  %s175_s5 = int_to_ptr.hbm [resolvable:$true] %s174_s5 }
  0x19   : > { %766 = dma.hbm_to_vmem [thread:$0]  (!%p761_p10), %s175_s5, 256, %s177_s9, [#allocation9], %s1334_s6, %s1334_s6, %s1336_s7  }
  0x1a   : > { %s28_s12 = ssub.s32 %s1030_s18, %s1123_s10  ;;  %p38_p12 = scmp.ne.s32.totalorder %s1026_s17, %s1022_s16 }
  0x1b   : > { %p29_p13 = scmp.eq.s32.totalorder %s28_s12, 0  ;;  %p39_p0 = scmp.eq.s32.totalorder %s1030_s18, 0 }
  0x1c   : > { %p1133_p3 = por %p136_p2, %p38_p12  ;;  %p780_p5 = scmp.lt.s32.totalorder %s1030_s18, 2 }
  0x1d   : > { %s1139_s14 = scalar_select %p29_p13, %s1026_s17, %s31_s11  }
  0x1e   : > { %p40_p7 = por %p39_p0, %p38_p12  ;;  %s190_s20 = sand.u32 1, %s1026_s17  }
  0x1f   : > { %1348 = sst [smem:[#allocation17_spill]] %s1139_s14  ;;  %s1142_s23 = smul.u32 48, %s190_s20 }
  0x20   : > { %s729_s24 = smul.u32 48, %s1030_s18  ;;  %p1145_p9 = pnand %p780_p5, %p40_p7 }
  0x21   : > { %s213_s27 = sand.u32 1, %s1030_s18   ;;  %s194_s5 = scalar_lea.vmem [#allocation2], %s1142_s23 }
  0x22   : > { %s200_s30 = scalar_lea.hbm %s1329_s0, %s729_s24  ;;  %s203_s8 = sshll.u32 %s194_s5, 4  ;;  %s204_s8 = int_to_ptr.vmem [resolvable:$true] %s203_s8 }
  0x23   : > { %s201_s9 = sshll.u32 %s200_s30, 4  ;;  %s191_s11 = scalar_lea.sflag [#allocation3], %s190_s20  ;;  %s202_s9 = int_to_ptr.hbm [resolvable:$true] %s201_s9 }
  0x24   : > { %s892_s12 = sshra.s32 %s202_s9, 4  ;;  %p896_p10 = pneg %p1145_p9  ;;  %s893_s12 = int_to_ptr.hbm [resolvable:$true] %s892_s12 }
  0x25   : > { %s894_s6 = scalar_lea.hbm %s893_s12, 48  ;;  %s899_s28 = scalar_lea.hbm %s1329_s0, 96 }
  0x26   : > { %p895_p2 = scmp.ne.s32.totalorder %s893_s12, %s894_s6  ;;  %p900_p0 = scmp.lt.s32.totalorder %s893_s12, %s1329_s0 }
  0x27   : > { %p901_p5 = scmp.lt.s32.totalorder %s899_s28, %s894_s6 }
  0x28   : > { %p897_p12 = pnand %p896_p10, %p895_p2 }
  0x29   : > { %p902_p7 = por %p901_p5, %p900_p0 }
  0x2a   : > { %p898_p13 = pneg %p897_p12 }
  0x2c   : > { %p903_p11 = pnand %p902_p7, %p898_p13 }
  0x2e   : > { %906 = shalt.err (!%p903_p11)
}
  0x2f   : > { %s1350_s20 = smov 8   ;;  %s1351_s30 = smov 128  }
  0x30   : > { %770 = dma.hbm_to_vmem [thread:$0]  (!%p1145_p9), %s202_s9, 768, %s204_s8, %s191_s11, %s1351_s30, %s1351_s30, %s1350_s20  }
  0x31   : > { %s223_s2 = scalar_lea.hbm %s1330_s1, %s729_s24  ;;  %s217_s7 = scalar_lea.vmem [#allocation5], %s1142_s23 }
  0x32   : > { %s226_s17 = sshll.u32 %s217_s7, 4  ;;  %s224_s29 = sshll.u32 %s223_s2, 4  ;;  %s227_s17 = int_to_ptr.vmem [resolvable:$true] %s226_s17  ;;  %s225_s29 = int_to_ptr.hbm [resolvable:$true] %s224_s29 }
  0x33   : > { %s214_s6 = scalar_lea.sflag [#allocation6], %s213_s27  ;;  %s922_s12 = sshra.s32 %s225_s29, 4  ;;  %s923_s12 = int_to_ptr.hbm [resolvable:$true] %s922_s12 }
  0x34   : > { %s924_s28 = scalar_lea.hbm %s923_s12, 48  ;;  %s929_s9 = scalar_lea.hbm %s1330_s1, 96 }
  0x35   : > { %p925_p11 = scmp.ne.s32.totalorder %s923_s12, %s924_s28  ;;  %p930_p13 = scmp.lt.s32.totalorder %s923_s12, %s1330_s1 }
  0x36   : > { %p931_p0 = scmp.lt.s32.totalorder %s929_s9, %s924_s28 }
  0x37   : > { %p927_p2 = pnand %p925_p11, %p896_p10 }
  0x38   : > { %p932_p5 = por %p931_p0, %p930_p13 }
  0x39   : > { %p928_p12 = pneg %p927_p2 }
  0x3b   : > { %p933_p7 = pnand %p932_p5, %p928_p12 }
  0x3d   : > { %936 = shalt.err (!%p933_p7)
}
  0x3e   : > { %773 = dma.hbm_to_vmem [thread:$0]  (!%p1145_p9), %s225_s29, 768, %s227_s17, %s214_s6, %s1351_s30, %s1351_s30, %s1350_s20  }
  0x3f   : > { %238 = sbr.rel (%p1104_p8) target bundleno = 580 (0x244), region = 36  ;;  %s1191_s23 = sand.u32 (!%p1104_p8), 1, %s1022_s16  }
  0x40   : > { %s739_s24 = smul.u32 (!%p1104_p8), 48, %s1191_s23  ;;  %s241_s27 = scalar_lea.sflag (!%p1104_p8), [#allocation3], %s1191_s23 }
  0x42   : > { %s1195_s11 = scalar_lea.vmem (!%p1104_p8), [#allocation2], %s739_s24 }
  0x44   : > { %997 = dma.done.wait (%p1091_p4), %s241_s27, 768  }
  0x45   : > { %999 = vsyncadd (%p1091_p4), %s241_s27, 4294966528  ;;  %s250_s17 = sand.u32 1, %s1082_s19   ;;  %s1202_s25 = scalar_lea.vmem [#allocation5], %s739_s24 }
  0x46   : > { %s251_s26 = scalar_lea.sflag [#allocation6], %s250_s17 }
  0x47   : > { %1001 = dma.done.wait (%p1091_p4), %s251_s26, 768  }
  0x48   : > { %1003 = vsyncadd (%p1091_p4), %s251_s26, 4294966528 }
  0x49   : > { %1005 = dma.done.wait (%p45_p1), [#allocation6], 256  }
  0x4a   : > { %1007 = vsyncadd (%p45_p1), [#allocation6], 4294967040 }
  0x4b   : > { %1009 = dma.done.wait (%p45_p1), [#allocation9], 256  }
  0x4c   : > { %1011 = vsyncadd (%p45_p1), [#allocation9], 4294967040  ;;  %v299_v0 = vld [vmem:[#allocation8 + $0x8] sm:$0xff]  ;;  %v298_v1 = vld [vmem:[#allocation8] sm:$0xff]  ;;  %vm318_vm0 = vcmask 130048   ;;  %s587_s30 = scalar_lea.hbm %s1333_s4, %s1082_s19  ;;  %s293_s29 = scalar_lea.vmem [#allocation10], %s1191_s23 }
  0x4d   : > { %v300_v2 = vld [vmem:[%s1195_s11] sm:$0xff]  ;;  %351 = vmatpush.msra.mxu0 %v299_v0  ;;  %733 = vmatpush.msra.mxu3 %v299_v0  ;;  %v305_v4 = vld [vmem:[%s1195_s11 + $0x28] sm:$0xff]  ;;  %v303_v11 = vld [vmem:[%s1195_s11 + $0x18] sm:$0xff]  ;;  %s589_s6 = sshll.u32 %s293_s29, 4  ;;  %s591_s28 = sshll.u32 %s587_s30, 4  ;;  %s590_s6 = int_to_ptr.vmem [resolvable:$true] %s589_s6  ;;  %s592_s28 = int_to_ptr.hbm [resolvable:$true] %s591_s28 }
  0x4e   : > { %v306_v3 = vld [vmem:[%s1202_s25] sm:$0xff]  ;;  %v311_v5 = vld [vmem:[%s1202_s25 + $0x28] sm:$0xff]  ;;  %732 = vmatpush.msra.mxu2 %v299_v0  ;;  %731 = vmatpush.msra.mxu1 %v299_v0  ;;  %v309_v12 = vld [vmem:[%s1202_s25 + $0x18] sm:$0xff]  ;;  %s579_s9 = scalar_lea.sflag [#allocation4], %s1191_s23  ;;  %s966_s3 = sshra.s32 %s592_s28, 4  ;;  %s967_s3 = int_to_ptr.hbm [resolvable:$true] %s966_s3 }
  0x4f   : > { %v312_v6 = vsub.f32 %v300_v2, %v306_v3  ;;  %v317_v7 = vsub.f32 %v305_v4, %v311_v5  ;;  %v304_v8 = vld [vmem:[%s1195_s11 + $0x20] sm:$0xff]  ;;  %352 = vmatpush.msra.mxu0 %v298_v1  ;;  %736 = vmatpush.msra.mxu3 %v298_v1  ;;  %v1226_v13 = vsub.f32 %v303_v11, %v309_v12  ;;  %v301_v14 = vld [vmem:[%s1195_s11 + $0x8] sm:$0xff]  ;;  %v302_v17 = vld [vmem:[%s1195_s11 + $0x10] sm:$0xff]  ;;  %s968_s14 = scalar_lea.hbm %s967_s3, 1  ;;  %s972_s27 = scalar_lea.hbm %s1333_s4, 2 }
  0x50   : > { %v310_v9 = vld [vmem:[%s1202_s25 + $0x20] sm:$0xff]  ;;  %735 = vmatpush.msra.mxu2 %v298_v1  ;;  %v307_v15 = vld [vmem:[%s1202_s25 + $0x8] sm:$0xff]  ;;  %734 = vmatpush.msra.mxu1 %v298_v1  ;;  %v308_v18 = vld [vmem:[%s1202_s25 + $0x10] sm:$0xff]  ;;  %p969_p1 = scmp.ne.s32.totalorder %s967_s3, %s968_s14  ;;  %p973_p9 = scmp.lt.s32.totalorder %s967_s3, %s1333_s4 }
  0x51   : > { %v316_v10 = vsub.f32 %v304_v8, %v310_v9  ;;  %711 = vmatmul.msk.f32.vlgmr.msra.gmra.mxu0 %vm318_vm0, %v312_v6  ;;  %716 = vmatmul.msk.f32.vlgmr.msra.gmra.mxu3 %vm318_vm0, %v317_v7  ;;  %v313_v16 = vsub.f32 %v301_v14, %v307_v15  ;;  %v314_v19 = vsub.f32 %v302_v17, %v308_v18  ;;  %v296_v23 = vld [vmem:[#allocation7] sm:$0xff]  ;;  %v297_v26 = vld [vmem:[#allocation7 + $0x8] sm:$0xff]  ;;  %p974_p10 = scmp.lt.s32.totalorder %s972_s27, %s968_s14 }
  0x52   : > { %714 = vmatmul.msk.f32.vlgmr.msra.gmra.mxu1 %vm318_vm0, %v1226_v13  ;;  %p970_p4 = pnand %p969_p1, %p1133_p3 }
  0x53   : > { %715 = vmatmul.msk.f32.vlgmr.msra.gmra.mxu2 %vm318_vm0, %v316_v10  ;;  %p975_p11 = por %p974_p10, %p973_p9 }
  0x54   : > { %p971_p8 = pneg %p970_p4 }
  0x56   : > { %p976_p2 = pnand %p975_p11, %p971_p8 }
  0x59   : > { %712 = vmatmul.msk.f32.gmra.mxu0 %vm318_vm0, %v313_v16 }
  0x61   : > { %713 = vmatmul.msk.f32.gmra.mxu0 %vm318_vm0, %v314_v19 }
  0xce   : > { %v354_v20 = vpop.f32.mrf.mxu0 }
  0xcf   : > { %v363_v21 = vpop.f32.mrf.mxu1 }
  0xd0   : > { %458 = vmatpush.msrb.mxu2 %v363_v21 }
  0xd4   : > { %v369_v22 = vpop.f32.mrf.mxu3 }
  0xd5   : > { %524 = vmatpush.msrb.mxu3 %v369_v22 }
  0xd6   : > { %v357_v24 = vpop.f32.mrf.mxu0  ;;  %v366_v25 = vpop.f32.mrf.mxu2 }
  0xd7   : > { %392 = vmatpush.msrb.mxu1 %v357_v24  ;;  %525 = vmatpush.msrb.mxu3 %v366_v25 }
  0xd8   : > { %721 = vmatmul.msk.f32.vlgmr.msrb.gmra.mxu3 %vm318_vm0, %v296_v23 }
  0xd9   : > { %393 = vmatpush.msrb.mxu1 %v354_v20 }
  0xda   : > { %717 = vmatmul.msk.f32.vlgmr.msrb.gmra.mxu1 %vm318_vm0, %v296_v23 }
  0xde   : > { %v360_v27 = vpop.f32.mrf.mxu0 }
  0xdf   : > { %459 = vmatpush.msrb.mxu2 %v360_v27 }
  0xe0   : > { %719 = vmatmul.msk.f32.vlgmr.msrb.gmra.mxu2 %vm318_vm0, %v296_v23  ;;  %722 = vmatmul.msk.f32.gmra.mxu3 %vm318_vm0, %v297_v26 }
  0xe2   : > { %718 = vmatmul.msk.f32.gmra.mxu1 %vm318_vm0, %v297_v26 }
  0xe8   : > { %720 = vmatmul.msk.f32.gmra.mxu2 %vm318_vm0, %v297_v26 }
 0x157   : > { %v395_v28 = vpop.f32.mrf.mxu1 }
 0x158   : > { %v401_v29 = vsub.f32 %v312_v6, %v395_v28 }
 0x15a   : > { %v403_v30 = vmul.f32 %v401_v29, %v401_v29 }
 0x15b   : > { %v527_v31 = vpop.f32.mrf.mxu3 }
 0x15c   : > { %v1243_v32 = vadd.f32 1e-06, %v403_v30  ;;  %v533_v33 = vsub.f32 %v316_v10, %v527_v31 }
 0x15e   : > { %820 = vrsqrt.f32 %v1243_v32  ;;  %v535_v34 = vmul.f32 %v533_v33, %v533_v33  ;;  %vm414_vm1 = vcmp.eq.f32.partialorder %v1243_v32, inf  ;;  %v417_v15 = vand.u32 2147483648, %v1243_v32 }
 0x15f   : > { %v398_v35 = vpop.f32.mrf.mxu1  ;;  %vm416_vm2 = vcmp.eq.f32.partialorder %v1243_v32, 0.0 }
 0x160   : > { %v1246_v36 = vadd.f32 1e-06, %v535_v34  ;;  %v402_v37 = vsub.f32 %v313_v16, %v398_v35 }
 0x162   : > { %822 = vrsqrt.f32 %v1246_v36  ;;  %v404_v38 = vmul.f32 %v402_v37, %v402_v37  ;;  %vm546_vm3 = vcmp.eq.f32.partialorder %v1246_v36, inf  ;;  %vm548_vm6 = vcmp.eq.f32.partialorder %v1246_v36, 0.0 }
 0x163   : > { %v461_v39 = vpop.f32.mrf.mxu2  ;;  %v530_v40 = vpop.f32.mrf.mxu3 }
 0x164   : > { %v821_v41 = vpop.eup %820  ;;  %v406_v42 = vadd.f32 1e-06, %v404_v38  ;;  %v467_v43 = vsub.f32 %v314_v19, %v461_v39  ;;  %v534_v44 = vsub.f32 %v317_v7, %v530_v40 }
 0x165   : > { %v408_v45 = vmul.f32 %v821_v41, %v1243_v32 }
 0x166   : > { %824 = vrsqrt.f32 %v406_v42  ;;  %v469_v46 = vmul.f32 %v467_v43, %v467_v43  ;;  %v536_v47 = vmul.f32 %v534_v44, %v534_v44  ;;  %vm426_vm4 = vcmp.eq.f32.partialorder %v406_v42, inf }
 0x167   : > { %v409_v48 = vmul.f32 %v821_v41, %v408_v45  ;;  %v429_v22 = vand.u32 2147483648, %v406_v42  ;;  %vm428_vm5 = vcmp.eq.f32.partialorder %v406_v42, 0.0 }
 0x168   : > { %v823_v49 = vpop.eup %822  ;;  %v1250_v50 = vadd.f32 1e-06, %v469_v46  ;;  %v1252_v51 = vadd.f32 1e-06, %v536_v47 }
 0x169   : > { %v410_v52 = vmul.f32 0.5, %v409_v48  ;;  %v540_v53 = vmul.f32 %v823_v49, %v1246_v36 }
 0x16a   : > { %826 = vrsqrt.f32 %v1250_v50  ;;  %vm558_vm7 = vcmp.eq.f32.partialorder %v1252_v51, inf  ;;  %v561_v38 = vand.u32 2147483648, %v1252_v51  ;;  %vm560_vm8 = vcmp.eq.f32.partialorder %v1252_v51, 0.0 }
 0x16b   : > { %828 = vrsqrt.f32 %v1252_v51  ;;  %v464_v54 = vpop.f32.mrf.mxu2  ;;  %v411_v55 = vsub.f32 1.5, %v410_v52  ;;  %v541_v56 = vmul.f32 %v823_v49, %v540_v53  ;;  %vm480_vm9 = vcmp.eq.f32.partialorder %v1250_v50, inf }
 0x16c   : > { %v825_v57 = vpop.eup %824  ;;  %v468_v58 = vsub.f32 %v1226_v13, %v464_v54  ;;  %v483_v48 = vand.u32 2147483648, %v1250_v50  ;;  %vm482_vm10 = vcmp.eq.f32.partialorder %v1250_v50, 0.0 }
 0x16d   : > { %v412_v59 = vmul.f32 %v821_v41, %v411_v55  ;;  %v420_v60 = vmul.f32 %v825_v57, %v406_v42  ;;  %v542_v61 = vmul.f32 0.5, %v541_v56 }
 0x16e   : > { %v470_v62 = vmul.f32 %v468_v58, %v468_v58 }
 0x16f   : > { %v421_v63 = vmul.f32 %v825_v57, %v420_v60  ;;  %v543_v0 = vsub.f32 1.5, %v542_v61  ;;  %v413_v4 = vmul.f32 %v412_v59, %v1243_v32 }
 0x170   : > { %v827_v1 = vpop.eup %826  ;;  %v1258_v2 = vadd.f32 1e-06, %v470_v62 }
 0x171   : > { %v829_v3 = vpop.eup %828  ;;  %v422_v5 = vmul.f32 0.5, %v421_v63  ;;  %v474_v6 = vmul.f32 %v827_v1, %v1250_v50  ;;  %v544_v7 = vmul.f32 %v823_v49, %v543_v0  ;;  %v415_v12 = vsel %vm414_vm1, %v1243_v32, %v413_v4 }
 0x172   : > { %830 = vrsqrt.f32 %v1258_v2  ;;  %v552_v8 = vmul.f32 %v829_v3, %v1252_v51  ;;  %v418_v21 = vsel %vm416_vm2, %v417_v15, %v415_v12  ;;  %v549_v32 = vand.u32 2147483648, %v1246_v36 }
 0x173   : > { %v423_v9 = vsub.f32 1.5, %v422_v5  ;;  %v475_v10 = vmul.f32 %v827_v1, %v474_v6  ;;  %v545_v16 = vmul.f32 %v544_v7, %v1246_v36  ;;  %v431_v30 = vsel %vm318_vm0, %v418_v21, 0.0 }
 0x174   : > { %v553_v11 = vmul.f32 %v829_v3, %v552_v8  ;;  %vm492_vm11 = vcmp.eq.f32.partialorder %v1258_v2, inf  ;;  %v495_v52 = vand.u32 2147483648, %v1258_v2  ;;  %vm494_vm12 = vcmp.eq.f32.partialorder %v1258_v2, 0.0 }
 0x175   : > { %v424_v13 = vmul.f32 %v825_v57, %v423_v9  ;;  %v476_v14 = vmul.f32 0.5, %v475_v10  ;;  %v547_v28 = vsel %vm546_vm3, %v1246_v36, %v545_v16 }
 0x176   : > { %v554_v17 = vmul.f32 0.5, %v553_v11  ;;  %v550_v37 = vsel %vm548_vm6, %v549_v32, %v547_v28 }
 0x177   : > { %v425_v18 = vmul.f32 %v424_v13, %v406_v42  ;;  %v477_v19 = vsub.f32 1.5, %v476_v14  ;;  %v563_v44 = vsel %vm318_vm0, %v550_v37, 0.0 }
 0x178   : > { %v831_v20 = vpop.eup %830  ;;  %v555_v23 = vsub.f32 1.5, %v554_v17 }
 0x179   : > { %v427_v24 = vsel %vm426_vm4, %v406_v42, %v425_v18  ;;  %v478_v25 = vmul.f32 %v827_v1, %v477_v19  ;;  %v486_v26 = vmul.f32 %v831_v20, %v1258_v2 }
 0x17a   : > { %v430_v27 = vsel %vm428_vm5, %v429_v22, %v427_v24  ;;  %v556_v29 = vmul.f32 %v829_v3, %v555_v23 }
 0x17b   : > { %v432_v31 = vsel %vm318_vm0, %v430_v27, 0.0  ;;  %v487_v33 = vmul.f32 %v831_v20, %v486_v26  ;;  %v479_v39 = vmul.f32 %v478_v25, %v1250_v50 }
 0x17c   : > { %v433_v34 = vadd.f32 %v432_v31, %v431_v30  ;;  %v557_v35 = vmul.f32 %v556_v29, %v1252_v51 }
 0x17d   : > { %v488_v40 = vmul.f32 0.5, %v487_v33  ;;  %v481_v46 = vsel %vm480_vm9, %v1250_v50, %v479_v39 }
 0x17e   : > { %434 = vadd.xlane.f32.xlu0 %v433_v34  ;;  %v559_v41 = vsel %vm558_vm7, %v1252_v51, %v557_v35  ;;  %v484_v51 = vsel %vm482_vm10, %v483_v48, %v481_v46 }
 0x17f   : > { %v562_v42 = vsel %vm560_vm8, %v561_v38, %v559_v41  ;;  %v489_v43 = vsub.f32 1.5, %v488_v40  ;;  %v497_v55 = vsel %vm318_vm0, %v484_v51, 0.0 }
 0x180   : > { %v564_v36 = vsel %vm318_vm0, %v562_v42, 0.0 }
 0x181   : > { %v565_v45 = vadd.f32 %v564_v36, %v563_v44  ;;  %v490_v47 = vmul.f32 %v831_v20, %v489_v43 }
 0x183   : > { %566 = vadd.xlane.f32.xlu1 %v565_v45  ;;  %v491_v49 = vmul.f32 %v490_v47, %v1258_v2 }
 0x185   : > { %v493_v53 = vsel %vm492_vm11, %v1258_v2, %v491_v49 }
 0x186   : > { %v496_v54 = vsel %vm494_vm12, %v495_v52, %v493_v53 }
 0x187   : > { %v498_v56 = vsel %vm318_vm0, %v496_v54, 0.0 }
 0x188   : > { %v499_v57 = vadd.f32 %v498_v56, %v497_v55 }
 0x18a   : > { %500 = vadd.xlane.f32.xlu0 %v499_v57 }
 0x1f1   : > { %v435_v58 = vpop.xlane.xlu0 %434 }
 0x1f2   : > { %v436_v50 = vrot.slane %v435_v58, 4 }
 0x1f4   : > { %v437_v59 = vadd.f32 %v436_v50, %v435_v58 }
 0x1f6   : > { %v438_v60 = vrot.slane %v437_v59, 2  ;;  %v567_v61 = vpop.xlane.xlu1 %566 }
 0x1f7   : > { %v568_v62 = vrot.slane %v567_v61, 4 }
 0x1f8   : > { %v439_v63 = vadd.f32 %v438_v60, %v437_v59 }
 0x1f9   : > { %v569_v0 = vadd.f32 %v568_v62, %v567_v61 }
 0x1fa   : > { %v440_v1 = vrot.slane %v439_v63, 1 }
 0x1fb   : > { %v570_v4 = vrot.slane %v569_v0, 2 }
 0x1fc   : > { %v441_v3 = vadd.f32 %v440_v1, %v439_v63 }
 0x1fd   : > { %v501_v2 = vpop.xlane.xlu0 %500  ;;  %v571_v7 = vadd.f32 %v570_v4, %v569_v0 }
 0x1fe   : > { %v502_v5 = vrot.slane %v501_v2, 4  ;;  %740 = vpush %v441_v3 }
 0x1ff   : > { %v572_v10 = vrot.slane %v571_v7, 1 }
 0x200   : > { %v503_v6 = vadd.f32 %v502_v5, %v501_v2 }
 0x201   : > { %v573_v13 = vadd.f32 %v572_v10, %v571_v7 }
 0x202   : > { %v504_v8 = vrot.slane %v503_v6, 2 }
 0x204   : > { %v505_v9 = vadd.f32 %v504_v8, %v503_v6 }
 0x206   : > { %v506_v11 = vrot.slane %v505_v9, 1 }
 0x208   : > { %v507_v12 = vadd.f32 %v506_v11, %v505_v9 }
 0x20a   : > { %742 = vpush %v507_v12 }
 0x20b   : > { %744 = vpush %v573_v13 }
 0x22f   : > { %s741_s2 = spop %740 }
 0x23b   : > { %s743_s7 = spop %742 }
 0x23c   : > { %s509_s12 = sadd.f32 %s743_s7, %s741_s2  ;;  %s745_s5 = spop %744 }
 0x23e   : > { %s575_s8 = sadd.f32 %s745_s5, %s509_s12 }
 0x240   : > { %v576_v14 = vstv %s575_s8 }
 0x241   : > { %577 = vst [vmem:[%s293_s29] sm:$0x1] %v576_v14 }
 0x242   : > { %979 = shalt.err (!%p976_p2)
}
 0x243   : > { %758 = dma.vmem_to_hbm [thread:$0]  (%p1133_p3), %s590_s6, 16, %s592_s28, %s579_s9  }
 0x244 PF: > { %s603_s23 = sand.u32 1, %s1018_s15   ;;  %p1352_p12 = scmp.ge.s32.totalorder %s1030_s18, 2 }
 0x245   : > { %s604_s26 = scalar_lea.sflag [#allocation4], %s603_s23 }
 0x246   : > { %p775_p13 = pnand %p1352_p12, %p1096_p6 }
 0x248   : > { %p776_p0 = pneg %p775_p13 }
 0x24a   : > { %1013 = dma.done.wait (%p776_p0), %s604_s26, 16  }
 0x24b   : > { %1015 = vsyncadd (%p776_p0), %s604_s26, 4294967280  ;;  %s1353_s25 = sld [smem:[#allocation16_spill]]  ;;  %p21_p5 = scmp.ge.s32.totalorder %s1123_s10, 4  }
 0x24c   : > { %s1354_s17 = sld [smem:[#allocation17_spill]]  ;;  %s1355_s15 = smov %s1022_s16 }
 0x24d   : > { %s1357_s18 = smov %s1123_s10  ;;  %23 = sbr.rel (!%p21_p5) target bundleno = 11 (0xb), region = 102 }
 0x251   : > { %s1356_s16 = smov %s1353_s25 }
 0x252   :  { %609 = vsyncpa [#allocation3], 1 }
 0x253   :  { %611 = vsyncpa [#allocation3 + $0x1], 1 }
 0x254   :  { %612 = vsyncpa [#allocation6], 1 }
 0x255   :  { %614 = vsyncpa [#allocation6 + $0x1], 1 }
 0x256   :  { %615 = vsyncpa [#allocation9], 1 }
 0x257   :  { %616 = vsyncpa [#allocation4], 1 }
 0x258   :  { %618 = vsyncpa [#allocation4 + $0x1], 1 }

</bundles_post_ra>
